<compile_context>
chip_gen: v7x
topology: tpu7x:2x2x1
jax: 0.10.0
libtpu: 0.0.40
codegen_flags: <defaults>
</compile_context>

<pallas_src>
import jax
import jax.numpy as jnp
from jax.experimental import pallas as pl
from jax.experimental.pallas import tpu as pltpu


def _cdiv(a, b):
    return -(-a // b)


# ---------------------------------------------------------------------------
# Pallas kernel: Nb batch elements per grid step.
# ---------------------------------------------------------------------------
def cam_kernel(x_ref, w1t_ref, b1_ref, w2t_ref, b2_ref, o_ref):
    x = x_ref[...]                                   # (Nb, C, L) native dtype
    nb, _, l = x.shape

    # --- pooling over L (f32 accumulation; no full f32 copy of the tile) ---
    if l > 128 and l % 128 == 0:
        # VPU-first fold: accumulate 128-lane column chunks elementwise
        # (VALU, 4 slots/cycle) so only ONE cross-lane XLU reduce per (n, c)
        # row remains for each of sum / max.
        s_acc = x[:, :, :128].astype(jnp.float32)
        m_acc = x[:, :, :128]
        for ci in range(1, l // 128):
            chunk = x[:, :, ci * 128:(ci + 1) * 128]
            s_acc = s_acc + chunk.astype(jnp.float32)
            m_acc = jnp.maximum(m_acc, chunk)
        ssum = jnp.sum(s_acc, axis=-1)               # (Nb, C)
        mx = jnp.max(m_acc, axis=-1).astype(jnp.float32)
    else:
        ssum = jnp.sum(x, axis=-1, dtype=jnp.float32)
        mx = jnp.max(x, axis=-1).astype(jnp.float32)
    avg = ssum * (1.0 / l)                           # (Nb, C) lane-dense

    # --- fused two-branch MLP: one stacked matmul pair ----------------------
    v = jnp.concatenate([avg, mx], axis=0)           # (2*Nb, C)
    w1t = w1t_ref[...]                               # (C, Cr) quaternion-structured (transposed)
    b1 = b1_ref[...]                                 # (1, Cr)
    w2t = w2t_ref[...]                               # (Cr, C) quaternion-structured (transposed)
    b2 = b2_ref[...]                                 # (1, C)

    h = jnp.dot(v, w1t, preferred_element_type=jnp.float32) + b1   # (2*Nb, Cr)
    h = jnp.maximum(h, 0.0)                          # ReLU(inplace=True) semantics
    z = jnp.dot(h, w2t, preferred_element_type=jnp.float32) + b2   # (2*Nb, C)

    # avg-branch + max-branch (b2 intentionally counted twice, matching the
    # PyTorch module, which runs conv1 on each pooled vector before summing).
    y = jax.nn.sigmoid(z[:nb] + z[nb:])              # (Nb, C) f32

    # --- final scale in NATIVE dtype (no f32 materialization of the tile) ---
    o_ref[...] = (x * y.astype(x.dtype)[:, :, None]).astype(o_ref.dtype)


# ---------------------------------------------------------------------------
# Chip-generation-aware sizing.
# ---------------------------------------------------------------------------
def _chip_params():
    kind = ""
    try:
        kind = jax.devices()[0].device_kind.lower()
    except Exception:
        pass
    if "v7" in kind or "7x" in kind:
        # 2 TensorCores / chip, 64 MiB physical VMEM (32 MiB default scoped).
        return dict(cores=2, target_tile_bytes=2 << 20,
                    vmem_budget_bytes=24 << 20, vmem_cap_bytes=48 << 20)
    if "v6" in kind:
        # 1 TC, 128 MiB physical VMEM -> bigger tiles amortize per-step cost.
        return dict(cores=1, target_tile_bytes=6 << 20,
                    vmem_budget_bytes=64 << 20, vmem_cap_bytes=100 << 20)
    if "v5p" in kind:
        return dict(cores=1, target_tile_bytes=6 << 20,
                    vmem_budget_bytes=64 << 20, vmem_cap_bytes=100 << 20)
    if "v5" in kind:
        # v5e: 1 TC, 128 MiB physical (16 MiB default scoped) -> raise it.
        return dict(cores=1, target_tile_bytes=4 << 20,
                    vmem_budget_bytes=48 << 20, vmem_cap_bytes=96 << 20)
    # Unknown / older chip: stay conservative, keep the compiler's default
    # scoped-VMEM limit (don't set vmem_limit_bytes).
    return dict(cores=1, target_tile_bytes=2 << 20,
                vmem_budget_bytes=12 << 20, vmem_cap_bytes=None)


# ---------------------------------------------------------------------------
# Wrapper
# ---------------------------------------------------------------------------
def cam_forward(x, w1, b1, w2, b2, *, nb=None):
    N, C, L = x.shape
    Cr = w1.shape[0]
    p = _chip_params()
    cores = p["cores"]

    elem_bytes = C * L * x.dtype.itemsize

    # --- choose batch block size Nb -------------------------------------
    if nb is None:
        # biggest tile within the target size and the double-buffered budget
        nb = max(1, min(p["target_tile_bytes"] // elem_bytes,
                        p["vmem_budget_bytes"] // (4 * elem_bytes)))
        if cores >= 2 and N >= 2:
            # give each v7x TensorCore >= ~3 pipelined steps where possible so
            # prefetch of tile i+1 overlaps the writeback of tile i.
            min_steps = min(N, 3 * cores)
            nb = min(nb, max(1, _cdiv(N, min_steps)))
    nb = int(max(1, min(nb, N)))
    grid_steps = _cdiv(N, nb)        # partial last block is fine (masked store)
    # TODO(synk): if a single batch element (4 * C * L * itemsize) exceeds the
    # per-chip VMEM budget (first on v7x's 64 MiB), fall back to a two-pass
    # pool-then-scale scheme or an inner emit_pipeline over L.

    # --- x input spec; triple-buffer on v7x when each core gets >= 3 steps --
    x_buffers = 2
    if cores >= 2 and grid_steps >= 3 * cores and hasattr(pl, "Buffered"):
        x_spec = pl.BlockSpec((nb, C, L), lambda n: (n, 0, 0),
                              pipeline_mode=pl.Buffered(3))
        x_buffers = 3
    else:
        x_spec = pl.BlockSpec((nb, C, L), lambda n: (n, 0, 0))

    # --- lane-dense weight / bias layouts --------------------------------
    w1t = jnp.asarray(w1).T                          # (C, Cr)
    w2t = jnp.asarray(w2).T                          # (Cr, C)
    b1r = jnp.reshape(b1, (1, Cr))                   # (1, Cr)
    b2r = jnp.reshape(b2, (1, C))                    # (1, C)

    # --- compiler params: tell Mosaic the actual VMEM footprint -----------
    cp = dict(dimension_semantics=("parallel",))
    if p["vmem_cap_bytes"] is not None:
        tile_bytes = nb * elem_bytes
        w_bytes = 2 * 4 * (C * Cr + Cr + Cr * C + C)   # double-buffered f32 params
        footprint = (x_buffers + 2) * tile_bytes + w_bytes + (4 << 20)
        cp["vmem_limit_bytes"] = int(min(p["vmem_cap_bytes"],
                                         max(footprint, 16 << 20)))

    return pl.pallas_call(
        cam_kernel,
        out_shape=jax.ShapeDtypeStruct((N, C, L), x.dtype),
        grid=(grid_steps,),
        in_specs=[
            x_spec,
            pl.BlockSpec((C, Cr), lambda n: (0, 0)),
            pl.BlockSpec((1, Cr), lambda n: (0, 0)),
            pl.BlockSpec((Cr, C), lambda n: (0, 0)),
            pl.BlockSpec((1, C), lambda n: (0, 0)),
        ],
        out_specs=pl.BlockSpec((nb, C, L), lambda n: (n, 0, 0)),
        compiler_params=pltpu.CompilerParams(**cp),
    )(x, w1t, b1r, w2t, b2r)


# ---------------------------------------------------------------------------
# Quaternion 1x1 conv weight construction (Parcollet-style Hamilton layout).
# A kernel_size=1 QuaternionConv is an (out_ch x in_ch) matmul whose weight is
# the block matrix [[r,-i,-j,-k],[i,r,-k,j],[j,k,r,-i],[k,-j,i,r]].
# ---------------------------------------------------------------------------
def make_quaternion_weight(key, out_ch, in_ch):
    assert out_ch % 4 == 0 and in_ch % 4 == 0
    o4, i4 = out_ch // 4, in_ch // 4
    kr, ki, kj, kk = jax.random.split(key, 4)
    scale = 1.0 / jnp.sqrt(jnp.float32(in_ch))
    # TODO(synk): real QuaternionConv init uses a chi-distributed magnitude +
    # random unit quaternion; deterministic uniform init is used here instead.
    r = jax.random.uniform(kr, (o4, i4), jnp.float32, -scale, scale)
    i = jax.random.uniform(ki, (o4, i4), jnp.float32, -scale, scale)
    j = jax.random.uniform(kj, (o4, i4), jnp.float32, -scale, scale)
    k = jax.random.uniform(kk, (o4, i4), jnp.float32, -scale, scale)
    row_r = jnp.concatenate([r, -i, -j, -k], axis=1)
    row_i = jnp.concatenate([i,  r, -k,  j], axis=1)
    row_j = jnp.concatenate([j,  k,  r, -i], axis=1)
    row_k = jnp.concatenate([k, -j,  i,  r], axis=1)
    return jnp.concatenate([row_r, row_i, row_j, row_k], axis=0)   # (out_ch, in_ch)


def cam_reference(x, w1, b1, w2, b2):
    """Plain-JAX reference of the PyTorch CAM.forward for verification."""
    avg = jnp.mean(x, axis=2, keepdims=True)         # (N, C, 1)
    mx = jnp.max(x, axis=2, keepdims=True)           # (N, C, 1)

    def mlp(v):                                      # v: (N, C, 1)
        h = jnp.einsum("oc,ncl->nol", w1, v) + b1[None]
        h = jnp.maximum(h, 0.0)
        return jnp.einsum("co,nol->ncl", w2, h) + b2[None]

    y = jax.nn.sigmoid(mlp(avg) + mlp(mx))
    return x * y


if __name__ == "__main__":
    # Module config: channel=64, reduction=16 -> hidden = 4 (divisible by 4,
    # as required by QuaternionConv).
    C, reduction = 64, 16
    Cr = C // reduction

    key = jax.random.PRNGKey(0)
    kx1, kx2, kw1, kb1, kw2, kb2 = jax.random.split(key, 6)

    w1 = make_quaternion_weight(kw1, Cr, C)                          # (Cr, C)
    b1 = jax.random.uniform(kb1, (Cr, 1), jnp.float32, -0.1, 0.1)    # (Cr, 1)
    w2 = make_quaternion_weight(kw2, C, Cr)                          # (C, Cr)
    b2 = jax.random.uniform(kb2, (C, 1), jnp.float32, -0.1, 0.1)     # (C, 1)

    # Test 1: small canonical shape (auto tiling).
    x1 = jax.random.normal(kx1, (2, C, 128), jnp.float32)
    out1 = jax.block_until_ready(cam_forward(x1, w1, b1, w2, b2))
    ref1 = cam_reference(x1, w1, b1, w2, b2)
    assert out1.shape == x1.shape and out1.dtype == x1.dtype
    assert jnp.allclose(out1, ref1, atol=1e-5, rtol=1e-5), "mismatch vs reference (test 1)"

    # Test 2: odd N with forced nb=2 (partial last block) and L > 128
    # (exercises the VPU-first chunked reduction path).
    x2 = jax.random.normal(kx2, (5, C, 384), jnp.float32)
    out2 = jax.block_until_ready(cam_forward(x2, w1, b1, w2, b2, nb=2))
    ref2 = cam_reference(x2, w1, b1, w2, b2)
    assert out2.shape == x2.shape and out2.dtype == x2.dtype
    assert jnp.allclose(out2, ref2, atol=1e-5, rtol=1e-5), "mismatch vs reference (test 2)"

    print("KERNEL_OK")
</pallas_src>

<mosaic_0001>
module attributes {stable_mosaic.version = 11 : i64} {
  func.func @cam_kernel(%arg0: i32, %arg1: memref<2x64x128xf32, #tpu.memory_space<vmem>>, %arg2: memref<64x4xf32, #tpu.memory_space<vmem>>, %arg3: memref<1x4xf32, #tpu.memory_space<vmem>>, %arg4: memref<4x64xf32, #tpu.memory_space<vmem>>, %arg5: memref<1x64xf32, #tpu.memory_space<vmem>>, %arg6: memref<2x64x128xf32, #tpu.memory_space<vmem>>) attributes {dimension_semantics = [#tpu.dimension_semantics<parallel>], iteration_bounds = array<i64: 1>, scalar_prefetch = 0 : i64, scratch_operands = 0 : i64, tpu.core_type = #tpu.core_type<tc>, window_params = [{transform_indices = @transform_0, window_bounds = array<i64: 2, 64, 128>}, {pipeline_mode = #tpu.pipeline_mode<synchronous>, transform_indices = @transform_1, window_bounds = array<i64: 64, 4>}, {pipeline_mode = #tpu.pipeline_mode<synchronous>, transform_indices = @transform_2, window_bounds = array<i64: 1, 4>}, {pipeline_mode = #tpu.pipeline_mode<synchronous>, transform_indices = @transform_3, window_bounds = array<i64: 4, 64>}, {pipeline_mode = #tpu.pipeline_mode<synchronous>, transform_indices = @transform_4, window_bounds = array<i64: 1, 64>}, {transform_indices = @transform_5, window_bounds = array<i64: 2, 64, 128>}]} {
    %c0 = arith.constant 0 : index
    %c0_0 = arith.constant 0 : index
    %c0_1 = arith.constant 0 : index
    %0 = vector.load %arg1[%c0, %c0_0, %c0_1] : memref<2x64x128xf32, #tpu.memory_space<vmem>>, vector<2x64x128xf32>
    %cst = arith.constant dense<0.000000e+00> : vector<2x64xf32>
    %1 = vector.multi_reduction <add>, %0, %cst [2] : vector<2x64x128xf32> to vector<2x64xf32>
    %cst_2 = arith.constant dense<0xFF800000> : vector<2x64xf32>
    %2 = vector.multi_reduction <maximumf>, %0, %cst_2 [2] : vector<2x64x128xf32> to vector<2x64xf32>
    %cst_3 = arith.constant 7.812500e-03 : f32
    %3 = vector.broadcast %cst_3 : f32 to vector<2x64xf32>
    %4 = arith.mulf %1, %3 : vector<2x64xf32>
    %5 = tpu.concatenate %4, %2 in 0 : vector<2x64xf32>, vector<2x64xf32> -> vector<4x64xf32>
    %c0_4 = arith.constant 0 : index
    %c0_5 = arith.constant 0 : index
    %6 = vector.load %arg2[%c0_4, %c0_5] : memref<64x4xf32, #tpu.memory_space<vmem>>, vector<64x4xf32>
    %c0_6 = arith.constant 0 : index
    %c0_7 = arith.constant 0 : index
    %7 = vector.load %arg3[%c0_6, %c0_7] : memref<1x4xf32, #tpu.memory_space<vmem>>, vector<1x4xf32>
    %c0_8 = arith.constant 0 : index
    %c0_9 = arith.constant 0 : index
    %8 = vector.load %arg4[%c0_8, %c0_9] : memref<4x64xf32, #tpu.memory_space<vmem>>, vector<4x64xf32>
    %c0_10 = arith.constant 0 : index
    %c0_11 = arith.constant 0 : index
    %9 = vector.load %arg5[%c0_10, %c0_11] : memref<1x64xf32, #tpu.memory_space<vmem>>, vector<1x64xf32>
    %cst_12 = arith.constant dense<0.000000e+00> : vector<4x4xf32>
    %10 = tpu.matmul %5, %6, %cst_12 {dimension_numbers = #tpu.dot_dimension_numbers<[1], [0], [0], [1], [0, 0, 1, 1], [], []>} : vector<4x64xf32>, vector<64x4xf32>, vector<4x4xf32> -> vector<4x4xf32>
    %11 = vector.broadcast %7 : vector<1x4xf32> to vector<4x4xf32>
    %12 = arith.addf %10, %11 : vector<4x4xf32>
    %cst_13 = arith.constant 0.000000e+00 : f32
    %13 = vector.broadcast %cst_13 : f32 to vector<4x4xf32>
    %14 = arith.maximumf %12, %13 : vector<4x4xf32>
    %cst_14 = arith.constant dense<0.000000e+00> : vector<4x64xf32>
    %15 = tpu.matmul %14, %8, %cst_14 {dimension_numbers = #tpu.dot_dimension_numbers<[1], [0], [0], [1], [0, 0, 1, 1], [], []>} : vector<4x4xf32>, vector<4x64xf32>, vector<4x64xf32> -> vector<4x64xf32>
    %16 = vector.broadcast %9 : vector<1x64xf32> to vector<4x64xf32>
    %17 = arith.addf %15, %16 : vector<4x64xf32>
    %18 = vector.extract_strided_slice %17 {offsets = [0, 0], sizes = [2, 64], strides = [1, 1]} : vector<4x64xf32> to vector<2x64xf32>
    %19 = vector.extract_strided_slice %17 {offsets = [2, 0], sizes = [2, 64], strides = [1, 1]} : vector<4x64xf32> to vector<2x64xf32>
    %20 = arith.addf %18, %19 : vector<2x64xf32>
    %21 = arith.negf %20 : vector<2x64xf32>
    %22 = math.exp %21 : vector<2x64xf32>
    %cst_15 = arith.constant 1.000000e+00 : f32
    %23 = vector.broadcast %cst_15 : f32 to vector<2x64xf32>
    %24 = arith.addf %23, %22 : vector<2x64xf32>
    %25 = arith.divf %23, %24 : vector<2x64xf32>
    %26 = vector.shape_cast %25 : vector<2x64xf32> to vector<2x64x1xf32>
    %27 = vector.broadcast %26 : vector<2x64x1xf32> to vector<2x64x128xf32>
    %28 = arith.mulf %0, %27 : vector<2x64x128xf32>
    %c0_16 = arith.constant 0 : index
    %c0_17 = arith.constant 0 : index
    %c0_18 = arith.constant 0 : index
    %29 = vector.load %arg6[%c0_16, %c0_17, %c0_18] : memref<2x64x128xf32, #tpu.memory_space<vmem>>, vector<2x64x128xf32>
    tpu.vector_store %arg6[%c0_16, %c0_17, %c0_18], %28 {strides = array<i32>} : memref<2x64x128xf32, #tpu.memory_space<vmem>>, vector<2x64x128xf32>,
    return
  }
  func.func @transform_0(%arg0: i32) -> (i32, i32, i32) {
    %c0_i32 = arith.constant 0 : i32
    %c0_i32_0 = arith.constant 0 : i32
    %c0_i32_1 = arith.constant 0 : i32
    return %arg0, %c0_i32, %c0_i32_0 : i32, i32, i32
  }
  func.func @transform_1(%arg0: i32) -> (i32, i32) {
    %c0_i32 = arith.constant 0 : i32
    %c0_i32_0 = arith.constant 0 : i32
    %c0_i32_1 = arith.constant 0 : i32
    return %c0_i32, %c0_i32_0 : i32, i32
  }
  func.func @transform_2(%arg0: i32) -> (i32, i32) {
    %c0_i32 = arith.constant 0 : i32
    %c0_i32_0 = arith.constant 0 : i32
    %c0_i32_1 = arith.constant 0 : i32
    return %c0_i32, %c0_i32_0 : i32, i32
  }
  func.func @transform_3(%arg0: i32) -> (i32, i32) {
    %c0_i32 = arith.constant 0 : i32
    %c0_i32_0 = arith.constant 0 : i32
    %c0_i32_1 = arith.constant 0 : i32
    return %c0_i32, %c0_i32_0 : i32, i32
  }
  func.func @transform_4(%arg0: i32) -> (i32, i32) {
    %c0_i32 = arith.constant 0 : i32
    %c0_i32_0 = arith.constant 0 : i32
    %c0_i32_1 = arith.constant 0 : i32
    return %c0_i32, %c0_i32_0 : i32, i32
  }
  func.func @transform_5(%arg0: i32) -> (i32, i32, i32) {
    %c0_i32 = arith.constant 0 : i32
    %c0_i32_0 = arith.constant 0 : i32
    %c0_i32_1 = arith.constant 0 : i32
    return %arg0, %c0_i32, %c0_i32_0 : i32, i32, i32
  }
}

</mosaic_0001>

<bundles_post_ra>
// kernel: tpu_custom_call.1
= control target key start
LH: loop header
LB: loop body
LE: loop exit
PB: predicated region body
PF: predicated region fallthrough
CT: control target
= control target key end

     0   :  { %10 = vsyncpa [#allocation3], 0  ;;  %s1060_s0 = inlined_call_operand.hbm [shape: f32[2,64,128], index: 0, kind: input, shape index: {}]   ;;  %s1061_s1 = inlined_call_operand.vmem [shape: f32[64,4], index: 1, kind: input, shape index: {}]   ;;  %s1062_s2 = inlined_call_operand.vmem [shape: f32[1,4], index: 2, kind: input, shape index: {}]   ;;  %s1063_s3 = inlined_call_operand.vmem [shape: f32[4,64], index: 3, kind: input, shape index: {}]   ;;  %s1064_s4 = inlined_call_operand.vmem [shape: f32[1,64], index: 4, kind: input, shape index: {}]   ;;  %s1065_s5 = inlined_call_operand.hbm [shape: f32[2,64,128], index: 5, kind: output, shape index: {}]  }
   0x1   :  { %11 = vsyncpa [#allocation4], 0  ;;  %s760_s18 = smov [#allocation2]   ;;  %s712_s22 = scalar_lea.hbm %s1060_s0, 2048 }
   0x2   :  { %s17_s19 = sshll.u32 %s760_s18, 4  ;;  %p713_p0 = scmp.ne.s32.totalorder %s1060_s0, %s712_s22  ;;  %s18_s19 = int_to_ptr.vmem [resolvable:$true] %s17_s19 }
   0x3   :  { %p716_p1 = scmp.lt.u32.totalorder %s712_s22, %s1060_s0 }
   0x5   :  { %p718_p2 = pnand %p716_p1, %p713_p0 }
   0x7   :  { %721 = shalt.err (!%p718_p2)
}
   0x8   :  { %s722_s27 = scalar_lea.vmem %s18_s19, 2048  ;;  %p727_p4 = scmp.lt.s32.totalorder %s18_s19, %s18_s19 }
   0x9   :  { %p723_p3 = scmp.ne.s32.totalorder %s18_s19, %s722_s27  ;;  %p728_p5 = scmp.lt.s32.totalorder %s722_s27, %s722_s27 }
   0xb   :  { %p729_p6 = por %p728_p5, %p727_p4 }
   0xd   :  { %p730_p7 = pnand %p729_p6, %p723_p3 }
   0xf   :  { %733 = shalt.err (!%p730_p7)
}
  0x10   :  { %s761_s28 = smov 128   ;;  %s762_s29 = smov 8  }
  0x11   :  { %23 = dma.hbm_to_vmem [thread:$0]  %s1060_s0, 2048, %s18_s19, [#allocation3], %s761_s28, %s761_s28, %s762_s29  }
  0x12   :  { %756 = dma.done.wait [#allocation3], 2048  }
  0x13   :  { %757 = vsyncadd [#allocation3], 4294965248  ;;  %v812_v0 = vld [vmem:[#allocation2 + $0x40] sm:$0xff]  ;;  %v818_v2 = vld [vmem:[#allocation2 + $0x48] sm:$0xff]  ;;  %v763_v19 = vmov 0.0|0.0   ;;  %vm764_vm0 = vmmov 0   ;;  %v147_v46 = vlaneseq }
  0x14   :  { %v814_v1 = vld [vmem:[#allocation2] sm:$0xff]  ;;  %67 = vadd.xlane.f32.xlu1 %v812_v0  ;;  %v820_v3 = vld [vmem:[#allocation2 + $0x8] sm:$0xff]  ;;  %v824_v4 = vld [vmem:[#allocation2 + $0x50] sm:$0xff]  ;;  %689 = vmatprep.subr.bf16.mxu0 %v763_v19  ;;  %v765_v29 = vmov 0.0   ;;  %vm158_vm1 = vcmask 130112   ;;  %vm165_vm2 = vcmask 195712  }
  0x15   :  { %51 = vadd.xlane.f32.xlu0 %v814_v1  ;;  %v826_v5 = vld [vmem:[#allocation2 + $0x10] sm:$0xff]  ;;  %v830_v6 = vld [vmem:[#allocation2 + $0x58] sm:$0xff]  ;;  %v840_v8 = vld [vmem:[#allocation2 + $0x60] sm:$0xff]  ;;  %681 = vmatprep.mubr.msk.f32.mxu0 %vm764_vm0, %v765_v29  ;;  %v148_v49 = vand.u32 127, %v147_v46  ;;  %v912_v50 = vshrl.u32 %v147_v46, 7  ;;  %vm172_vm3 = vcmask 261312  }
  0x16   :  { %v832_v7 = vld [vmem:[#allocation2 + $0x18] sm:$0xff]  ;;  %v842_v9 = vld [vmem:[#allocation2 + $0x20] sm:$0xff]  ;;  %v848_v10 = vld [vmem:[#allocation2 + $0x68] sm:$0xff]  ;;  %684 = vmatprep.subr.mxu1 %v765_v29  ;;  %686 = vmatprep.mubr.msk.f32.mxu1 %vm764_vm0, %v765_v29  ;;  %vm179_vm4 = vcmask 326912   ;;  %vm186_vm5 = vcmask 392512   ;;  %vm193_vm6 = vcmask 458112  }
  0x17   :  { %v850_v11 = vld [vmem:[#allocation2 + $0x28] sm:$0xff]  ;;  %v856_v12 = vld [vmem:[#allocation2 + $0x70] sm:$0xff]  ;;  %v864_v14 = vld [vmem:[#allocation2 + $0x78] sm:$0xff]  ;;  %v153_v51 = vadd.s32 4294967288, %v148_v49  ;;  %v160_v54 = vadd.s32 4294967280, %v148_v49  ;;  %v167_v55 = vadd.s32 4294967272, %v148_v49  ;;  %v919_v56 = vsub.s32 %v148_v49, %v912_v50 }
  0x18   :  { %69 = vadd.xlane.f32.xlu1 %v818_v2  ;;  %v858_v13 = vld [vmem:[#allocation2 + $0x30] sm:$0xff]  ;;  %v866_v15 = vld [vmem:[#allocation2 + $0x38] sm:$0xff]  ;;  %v343_v16 = vld [vmem:[%s1061_s1] sm:$0xff]  ;;  %v174_v63 = vadd.s32 4294967264, %v148_v49  ;;  %vm200_vm7 = vcmask 523712   ;;  %vm241_vm8 = vcmask 1041409  }
  0x19   :  { %53 = vadd.xlane.f32.xlu0 %v820_v3  ;;  %v344_v17 = vld [vmem:[%s1061_s1 + $0x8] sm:$0xff]  ;;  %v345_v20 = vld [vmem:[%s1061_s1 + $0x10] sm:$0xff]  ;;  %v346_v21 = vld [vmem:[%s1061_s1 + $0x18] sm:$0xff]  ;;  %v922_v57 = vsub.s32 %v153_v51, %v912_v50  ;;  %v925_v62 = vsub.s32 %v160_v54, %v912_v50  ;;  %vm338_vm9 = vcmask 1043459   ;;  %vm341_vm10 = vcmask 1041408  }
  0x1a   :  { %v690_v18 = vpack.c.bf16 %v344_v17, %v343_v16  ;;  %v693_v22 = vpack.c.bf16 %v346_v21, %v345_v20  ;;  %v347_v23 = vld [vmem:[%s1061_s1 + $0x20] sm:$0xff]  ;;  %v348_v24 = vld [vmem:[%s1061_s1 + $0x28] sm:$0xff]  ;;  %v349_v26 = vld [vmem:[%s1061_s1 + $0x30] sm:$0xff]  ;;  %v181_v16 = vadd.s32 4294967256, %v148_v49  ;;  %vm360_vm11 = vcmask 523264  }
  0x1b   :  { %v696_v25 = vpack.c.bf16 %v348_v24, %v347_v23  ;;  %v350_v27 = vld [vmem:[%s1061_s1 + $0x38] sm:$0xff]  ;;  %v195_v23 = vadd.s32 4294967240, %v148_v49  ;;  %vm445_vm12 = vcmask 1043456   ;;  %vm441_vm13 = vcmask 31744  }
  0x1c   :  { %71 = vadd.xlane.f32.xlu1 %v824_v4  ;;  %691 = vmatpush3.bf16.msra.mxu0 %v690_v18  ;;  %v699_v28 = vpack.c.bf16 %v350_v27, %v349_v26 }
  0x1d   :  { %55 = vadd.xlane.f32.xlu0 %v826_v5  ;;  %692 = vmatprep.subr.bf16.mxu0 %v763_v19 }
  0x20   :  { %73 = vadd.xlane.f32.xlu1 %v830_v6  ;;  %694 = vmatpush3.bf16.msra.mxu0 %v693_v22  ;;  %v188_v22 = vadd.s32 4294967248, %v148_v49  ;;  %v950_v49 = vsub.s32 %v195_v23, %v912_v50 }
  0x21   :  { %57 = vadd.xlane.f32.xlu0 %v832_v7  ;;  %695 = vmatprep.subr.bf16.mxu0 %v763_v19 }
  0x22   :  { %v947_v46 = vsub.s32 %v188_v22, %v912_v50 }
  0x24   :  { %85 = vmax.xlane.f32.xlu1 %v820_v3  ;;  %697 = vmatpush3.bf16.msra.mxu0 %v696_v25 }
  0x25   :  { %83 = vmax.xlane.f32.xlu0 %v814_v1  ;;  %698 = vmatprep.subr.bf16.mxu0 %v763_v19  ;;  %v928_v19 = vsub.s32 %v167_v55, %v912_v50 }
  0x28   :  { %101 = vmax.xlane.f32.xlu1 %v818_v2  ;;  %700 = vmatpush3.bf16.msra.mxu0 %v699_v28 }
  0x29   :  { %99 = vmax.xlane.f32.xlu0 %v812_v0 }
  0x2c   :  { %75 = vadd.xlane.f32.xlu1 %v840_v8 }
  0x2d   :  { %59 = vadd.xlane.f32.xlu0 %v842_v9 }
  0x30   :  { %103 = vmax.xlane.f32.xlu1 %v824_v4 }
  0x31   :  { %87 = vmax.xlane.f32.xlu0 %v826_v5 }
  0x34   :  { %77 = vadd.xlane.f32.xlu1 %v848_v10 }
  0x35   :  { %61 = vadd.xlane.f32.xlu0 %v850_v11 }
  0x38   :  { %105 = vmax.xlane.f32.xlu1 %v830_v6 }
  0x39   :  { %89 = vmax.xlane.f32.xlu0 %v832_v7 }
  0x3c   :  { %79 = vadd.xlane.f32.xlu1 %v856_v12 }
  0x3d   :  { %63 = vadd.xlane.f32.xlu0 %v858_v13 }
  0x40   :  { %107 = vmax.xlane.f32.xlu1 %v840_v8 }
  0x41   :  { %91 = vmax.xlane.f32.xlu0 %v842_v9 }
  0x44   :  { %81 = vadd.xlane.f32.xlu1 %v864_v14 }
  0x45   :  { %65 = vadd.xlane.f32.xlu0 %v866_v15 }
  0x48   :  { %109 = vmax.xlane.f32.xlu1 %v848_v10 }
  0x49   :  { %93 = vmax.xlane.f32.xlu0 %v850_v11 }
  0x4c   :  { %111 = vmax.xlane.f32.xlu1 %v856_v12 }
  0x4d   :  { %95 = vmax.xlane.f32.xlu0 %v858_v13 }
  0x50   :  { %113 = vmax.xlane.f32.xlu1 %v864_v14 }
  0x51   :  { %97 = vmax.xlane.f32.xlu0 %v866_v15 }
  0xa1   :  { %v68_v30 = vpop.xlane.xlu1 %67 }
  0xa2   :  { %v52_v31 = vpop.xlane.xlu0 %51  ;;  %v123_v17 = vmul.f32 0.0078125, %v68_v30  ;;  %v937_v30 = vsub.s32 %v174_v63, %v912_v50 }
  0xa3   :  { %v115_v18 = vmul.f32 0.0078125, %v52_v31  ;;  %v940_v31 = vsub.s32 %v181_v16, %v912_v50 }
  0xa5   :  { %v70_v32 = vpop.xlane.xlu1 %69 }
  0xa6   :  { %v54_v33 = vpop.xlane.xlu0 %53  ;;  %v124_v58 = vmul.f32 0.0078125, %v70_v32  ;;  %v205_v32 = vrot.slane %v123_v17, %v919_v56 }
  0xa7   :  { %v116_v59 = vmul.f32 0.0078125, %v54_v33  ;;  %v152_v33 = vrot.slane %v115_v18, %v919_v56 }
  0xa8   :  { %v209_v24 = vrot.slane %v124_v58, %v922_v57 }
  0xa9   :  { %v72_v34 = vpop.xlane.xlu1 %71  ;;  %v157_v25 = vrot.slane %v116_v59, %v922_v57 }
  0xaa   :  { %v56_v35 = vpop.xlane.xlu0 %55  ;;  %v125_v20 = vmul.f32 0.0078125, %v72_v34  ;;  %v210_v51 = vsel %vm158_vm1, %v209_v24, %v205_v32 }
  0xab   :  { %v117_v21 = vmul.f32 0.0078125, %v56_v35  ;;  %v159_v54 = vsel %vm158_vm1, %v157_v25, %v152_v33 }
  0xad   :  { %v74_v36 = vpop.xlane.xlu1 %73 }
  0xae   :  { %v58_v37 = vpop.xlane.xlu0 %57  ;;  %v126_v26 = vmul.f32 0.0078125, %v74_v36  ;;  %v214_v36 = vrot.slane %v125_v20, %v925_v62 }
  0xaf   :  { %v118_v27 = vmul.f32 0.0078125, %v58_v37  ;;  %v164_v37 = vrot.slane %v117_v21, %v925_v62 }
  0xb0   :  { %v219_v55 = vrot.slane %v126_v26, %v928_v19  ;;  %v215_v23 = vsel %vm165_vm2, %v214_v36, %v210_v51 }
  0xb1   :  { %v900_v38 = vpop.xlane.xlu1 %85 }
  0xb2   :  { %v902_v39 = vpop.xlane.xlu0 %83  ;;  %v267_v59 = vrot.slane %v900_v38, %v922_v57  ;;  %v166_v38 = vsel %vm165_vm2, %v164_v37, %v159_v54 }
  0xb3   :  { %v263_v63 = vrot.slane %v902_v39, %v919_v56  ;;  %v220_v39 = vsel %vm172_vm3, %v219_v55, %v215_v23 }
  0xb5   :  { %v904_v40 = vpop.xlane.xlu1 %101 }
  0xb6   :  { %v906_v41 = vpop.xlane.xlu0 %99  ;;  %v306_v16 = vrot.slane %v904_v40, %v922_v57 }
  0xb7   :  { %v302_v17 = vrot.slane %v906_v41, %v919_v56 }
  0xb9   :  { %v76_v42 = vpop.xlane.xlu1 %75  ;;  %v307_v32 = vsel %vm158_vm1, %v306_v16, %v302_v17 }
  0xba   :  { %v60_v43 = vpop.xlane.xlu0 %59  ;;  %v127_v34 = vmul.f32 0.0078125, %v76_v42  ;;  %v171_v42 = vrot.slane %v118_v27, %v928_v19  ;;  %v268_v27 = vsel %vm158_vm1, %v267_v59, %v263_v63 }
  0xbb   :  { %v119_v35 = vmul.f32 0.0078125, %v60_v43 }
  0xbc   :  { %v224_v18 = vrot.slane %v127_v34, %v937_v30  ;;  %v173_v40 = vsel %vm172_vm3, %v171_v42, %v166_v38 }
  0xbd   :  { %v908_v44 = vpop.xlane.xlu1 %103  ;;  %v178_v20 = vrot.slane %v119_v35, %v937_v30 }
  0xbe   :  { %v910_v45 = vpop.xlane.xlu0 %87 }
  0xc1   :  { %v78_v47 = vpop.xlane.xlu1 %77 }
  0xc2   :  { %v62_v48 = vpop.xlane.xlu0 %61  ;;  %v128_v21 = vmul.f32 0.0078125, %v78_v47  ;;  %v311_v47 = vrot.slane %v908_v44, %v925_v62 }
  0xc3   :  { %v120_v22 = vmul.f32 0.0078125, %v62_v48  ;;  %v272_v48 = vrot.slane %v910_v45, %v925_v62 }
  0xc4   :  { %v229_v33 = vrot.slane %v128_v21, %v940_v31 }
  0xc5   :  { %v914_v52 = vpop.xlane.xlu1 %105  ;;  %v185_v34 = vrot.slane %v120_v22, %v940_v31 }
  0xc6   :  { %v916_v53 = vpop.xlane.xlu0 %89  ;;  %v316_v35 = vrot.slane %v914_v52, %v928_v19  ;;  %v312_v52 = vsel %vm165_vm2, %v311_v47, %v307_v32  ;;  %v648_v32 = vld [vmem:[%s1062_s2] ss:$0 sm:$0xff]  ;;  %s766_s2 = smov [#allocation5]  }
  0xc7   :  { %v277_v36 = vrot.slane %v916_v53, %v928_v19  ;;  %v273_v53 = vsel %vm165_vm2, %v272_v48, %v268_v27 }
  0xc8   :  { %v317_v59 = vsel %vm172_vm3, %v316_v35, %v312_v52  ;;  %v566_v52 = vsub.s32 1, %v912_v50 }
  0xc9   :  { %v80_v60 = vpop.xlane.xlu1 %79  ;;  %v278_v63 = vsel %vm172_vm3, %v277_v36, %v273_v53 }
  0xca   :  { %v64_v61 = vpop.xlane.xlu0 %63  ;;  %v129_v24 = vmul.f32 0.0078125, %v80_v60  ;;  %v225_v60 = vsel %vm179_vm4, %v224_v18, %v220_v39 }
  0xcb   :  { %v121_v25 = vmul.f32 0.0078125, %v64_v61  ;;  %v180_v61 = vsel %vm179_vm4, %v178_v20, %v173_v40 }
  0xcc   :  { %v234_v44 = vrot.slane %v129_v24, %v947_v46 }
  0xcd   :  { %v932_v28 = vpop.xlane.xlu1 %107  ;;  %v192_v45 = vrot.slane %v121_v25, %v947_v46 }
  0xce   :  { %v934_v29 = vpop.xlane.xlu0 %91  ;;  %v321_v62 = vrot.slane %v932_v28, %v937_v30  ;;  %v187_v28 = vsel %vm186_vm5, %v185_v34, %v180_v61 }
  0xcf   :  { %v282_v37 = vrot.slane %v934_v29, %v937_v30  ;;  %v194_v17 = vsel %vm193_vm6, %v192_v45, %v187_v28 }
  0xd0   :  { %v322_v18 = vsel %vm179_vm4, %v321_v62, %v317_v59 }
  0xd1   :  { %v82_v43 = vpop.xlane.xlu1 %81 }
  0xd2   :  { %v66_v58 = vpop.xlane.xlu0 %65  ;;  %v130_v57 = vmul.f32 0.0078125, %v82_v43 }
  0xd3   :  { %v122_v26 = vmul.f32 0.0078125, %v66_v58  ;;  %v230_v58 = vsel %vm186_vm5, %v229_v33, %v225_v60  ;;  %v650_v33 = vld [vmem:[%s1064_s4] ss:$0 sm:$0xff] }
  0xd4   :  { %v239_v51 = vrot.slane %v130_v57, %v950_v49  ;;  %v235_v16 = vsel %vm193_vm6, %v234_v44, %v230_v58 }
  0xd5   :  { %v110_v41 = vpop.xlane.xlu1 %109  ;;  %v199_v54 = vrot.slane %v122_v26, %v950_v49 }
  0xd6   :  { %v94_v56 = vpop.xlane.xlu0 %93  ;;  %v326_v19 = vrot.slane %v110_v41, %v940_v31  ;;  %v240_v20 = vsel %vm200_vm7, %v239_v51, %v235_v16 }
  0xd7   :  { %v287_v43 = vrot.slane %v94_v56, %v940_v31  ;;  %v283_v31 = vsel %vm179_vm4, %v282_v37, %v278_v63  ;;  %v201_v21 = vsel %vm200_vm7, %v199_v54, %v194_v17  ;;  %v531_v54 = vsub.s32 0, %v912_v50 }
  0xd8   :  { %v242_v41 = vsel %vm241_vm8, %v240_v20, %v201_v21 }
  0xd9   :  { %v112_v55 = vpop.xlane.xlu1 %111  ;;  %v288_v38 = vsel %vm186_vm5, %v287_v43, %v283_v31 }
  0xda   :  { %v96_v42 = vpop.xlane.xlu0 %95  ;;  %v331_v29 = vrot.slane %v112_v55, %v947_v46 }
  0xdb   :  { %v292_v30 = vrot.slane %v96_v42, %v947_v46  ;;  %v327_v46 = vsel %vm186_vm5, %v326_v19, %v322_v18 }
  0xdc   :  { %v332_v39 = vsel %vm193_vm6, %v331_v29, %v327_v46 }
  0xdd   :  { %v114_v22 = vpop.xlane.xlu1 %113  ;;  %v293_v40 = vsel %vm193_vm6, %v292_v30, %v288_v38 }
  0xde   :  { %v98_v23 = vpop.xlane.xlu0 %97  ;;  %v336_v24 = vrot.slane %v114_v22, %v950_v49 }
  0xdf   :  { %v297_v25 = vrot.slane %v98_v23, %v950_v49  ;;  %v352_v49 = vld [vmem:[%s1063_s3] sm:$0xf]  ;;  %s636_s3 = sshll.u32 %s766_s2, 4  ;;  %s637_s3 = int_to_ptr.vmem [resolvable:$true] %s636_s3 }
  0xe0   :  { %v337_v57 = vsel %vm200_vm7, %v336_v24, %v332_v39  ;;  %685 = vmatpush3.msk.msra.mxu1 %vm445_vm12, %v352_v49  ;;  %s734_s4 = scalar_lea.vmem %s637_s3, 2048  ;;  %p739_p9 = scmp.lt.s32.totalorder %s637_s3, %s637_s3 }
  0xe1   :  { %v298_v26 = vsel %vm200_vm7, %v297_v25, %v293_v40  ;;  %p735_p8 = scmp.ne.s32.totalorder %s637_s3, %s734_s4  ;;  %p740_p10 = scmp.lt.s32.totalorder %s734_s4, %s734_s4 }
  0xe2   :  { %v339_v56 = vsel %vm338_vm9, %v337_v57, %v298_v26 }
  0xe3   :  { %v342_v27 = vsel %vm341_vm10, %v242_v41, %v339_v56  ;;  %p741_p11 = por %p740_p10, %p739_p9 }
  0xe4   :  { %682 = vmatmul.mubr.msk.f32.vlgmr.msra.gmra.mrb[0].mxu0 %vm360_vm11, %v342_v27 }
  0xe5   :  { %p742_p12 = pnand %p741_p11, %p735_p8 }
 0x1b7   :  { %v430_v47 = vpop.f32.mrb[0].mxu0 }
 0x1b8   :  { %v431_v48 = vadd.f32 %v648_v32, %v430_v47  ;;  %v683_v60 = vpop.f32.mrb[1].mxu0 }
 0x1ba   :  { %v434_v61 = vmax.f32 %v431_v48, 0.0 }
 0x1bc   :  { %687 = vmatmul.mubr.msk.f32.vlgmr.msra.gmra.mrb[0].mxu1 %vm441_vm13, %v434_v61 }
 0x28f   :  { %v515_v34 = vpop.f32.mrb[0].mxu1 }
 0x290   :  { %v516_v35 = vadd.f32 %v650_v33, %v515_v34  ;;  %v688_v36 = vpop.f32.mrb[1].mxu1 }
 0x292   :  { %v520_v44 = vrot.slane %v516_v35, 2 }
 0x294   :  { %v522_v45 = vadd.f32 %v520_v44, %v516_v35 }
 0x296   :  { %v653_v62 = vmul.f32 -1.442695, %v522_v45 }
 0x298   :  { %708 = vpow2.f32 %v653_v62 }
 0x2a2   :  { %v709_v37 = vpop.eup %708 }
 0x2a3   :  { %v526_v51 = vadd.f32 1.0, %v709_v37 }
 0x2a5   :  { %710 = vrcp.f32 %v526_v51 }
 0x2af   :  { %v711_v55 = vpop.eup %710 }
 0x2b0   :  { %v532_v42 = vrot.slane %v711_v55, %v531_v54  ;;  %v567_v53 = vrot.slane %v711_v55, %v566_v52 }
 0x2b2   :  { %538 = vbcast.lane.b32.xlu1 %v532_v42, 264  ;;  %534 = vbcast.lane.b32.xlu0 %v532_v42, 256 }
 0x2b6   :  { %542 = vbcast.lane.b32.xlu1 %v532_v42, 272  ;;  %550 = vbcast.lane.b32.xlu0 %v532_v42, 288 }
 0x2ba   :  { %546 = vbcast.lane.b32.xlu1 %v532_v42, 280  ;;  %558 = vbcast.lane.b32.xlu0 %v532_v42, 304 }
 0x2be   :  { %554 = vbcast.lane.b32.xlu1 %v532_v42, 296  ;;  %569 = vbcast.lane.b32.xlu0 %v567_v53, 256 }
 0x2c2   :  { %562 = vbcast.lane.b32.xlu1 %v532_v42, 312  ;;  %577 = vbcast.lane.b32.xlu0 %v567_v53, 272 }
 0x2c6   :  { %573 = vbcast.lane.b32.xlu1 %v567_v53, 264  ;;  %585 = vbcast.lane.b32.xlu0 %v567_v53, 288 }
 0x2ca   :  { %581 = vbcast.lane.b32.xlu1 %v567_v53, 280  ;;  %593 = vbcast.lane.b32.xlu0 %v567_v53, 304 }
 0x2ce   :  { %589 = vbcast.lane.b32.xlu1 %v567_v53, 296 }
 0x2d2   :  { %597 = vbcast.lane.b32.xlu1 %v567_v53, 312 }
 0x324   :  { %v539_v19 = vpop.permute.xlu1 %538  ;;  %v535_v43 = vpop.permute.xlu0 %534 }
 0x325   :  { %v600_v58 = vmul.f32 %v539_v19, %v820_v3  ;;  %v599_v28 = vmul.f32 %v535_v43, %v814_v1 }
 0x327   :  { %616 = vst [vmem:[#allocation5 + $0x8] sm:$0xff] %v600_v58  ;;  %615 = vst [vmem:[#allocation5] sm:$0xff] %v599_v28 }
 0x328   :  { %v543_v50 = vpop.permute.xlu1 %542  ;;  %v551_v29 = vpop.permute.xlu0 %550 }
 0x329   :  { %v601_v30 = vmul.f32 %v543_v50, %v826_v5  ;;  %v603_v59 = vmul.f32 %v551_v29, %v842_v9 }
 0x32b   :  { %617 = vst [vmem:[#allocation5 + $0x10] sm:$0xff] %v601_v30  ;;  %619 = vst [vmem:[#allocation5 + $0x20] sm:$0xff] %v603_v59 }
 0x32c   :  { %v547_v63 = vpop.permute.xlu1 %546  ;;  %v559_v16 = vpop.permute.xlu0 %558 }
 0x32d   :  { %v602_v17 = vmul.f32 %v547_v63, %v832_v7  ;;  %v605_v18 = vmul.f32 %v559_v16, %v858_v13 }
 0x32f   :  { %618 = vst [vmem:[#allocation5 + $0x18] sm:$0xff] %v602_v17  ;;  %621 = vst [vmem:[#allocation5 + $0x30] sm:$0xff] %v605_v18 }
 0x330   :  { %v555_v3 = vpop.permute.xlu1 %554  ;;  %v570_v1 = vpop.permute.xlu0 %569 }
 0x331   :  { %v604_v31 = vmul.f32 %v555_v3, %v850_v11  ;;  %v607_v20 = vmul.f32 %v570_v1, %v812_v0 }
 0x333   :  { %620 = vst [vmem:[#allocation5 + $0x28] sm:$0xff] %v604_v31  ;;  %623 = vst [vmem:[#allocation5 + $0x40] sm:$0xff] %v607_v20 }
 0x334   :  { %v563_v5 = vpop.permute.xlu1 %562  ;;  %v578_v9 = vpop.permute.xlu0 %577 }
 0x335   :  { %v606_v21 = vmul.f32 %v563_v5, %v866_v15  ;;  %v609_v22 = vmul.f32 %v578_v9, %v824_v4 }
 0x337   :  { %622 = vst [vmem:[#allocation5 + $0x38] sm:$0xff] %v606_v21  ;;  %625 = vst [vmem:[#allocation5 + $0x50] sm:$0xff] %v609_v22 }
 0x338   :  { %v574_v7 = vpop.permute.xlu1 %573  ;;  %v586_v13 = vpop.permute.xlu0 %585 }
 0x339   :  { %v608_v23 = vmul.f32 %v574_v7, %v818_v2  ;;  %v611_v46 = vmul.f32 %v586_v13, %v840_v8 }
 0x33b   :  { %624 = vst [vmem:[#allocation5 + $0x48] sm:$0xff] %v608_v23  ;;  %627 = vst [vmem:[#allocation5 + $0x60] sm:$0xff] %v611_v46 }
 0x33c   :  { %v582_v11 = vpop.permute.xlu1 %581  ;;  %v594_v0 = vpop.permute.xlu0 %593 }
 0x33d   :  { %v610_v38 = vmul.f32 %v582_v11, %v830_v6  ;;  %v613_v24 = vmul.f32 %v594_v0, %v856_v12 }
 0x33f   :  { %626 = vst [vmem:[#allocation5 + $0x58] sm:$0xff] %v610_v38  ;;  %629 = vst [vmem:[#allocation5 + $0x70] sm:$0xff] %v613_v24 }
 0x340   :  { %v590_v15 = vpop.permute.xlu1 %589 }
 0x341   :  { %v612_v4 = vmul.f32 %v590_v15, %v848_v10 }
 0x343   :  { %628 = vst [vmem:[#allocation5 + $0x68] sm:$0xff] %v612_v4 }
 0x344   :  { %v598_v25 = vpop.permute.xlu1 %597 }
 0x345   :  { %v614_v2 = vmul.f32 %v598_v25, %v864_v14 }
 0x347   :  { %630 = vst [vmem:[#allocation5 + $0x78] sm:$0xff] %v614_v2 }
 0x348   :  { %745 = shalt.err (!%p742_p12)
}
 0x349   :  { %s746_s6 = scalar_lea.hbm %s1065_s5, 2048 }
 0x34a   :  { %p747_p13 = scmp.ne.s32.totalorder %s1065_s5, %s746_s6  ;;  %p750_p0 = scmp.lt.u32.totalorder %s746_s6, %s1065_s5 }
 0x34c   :  { %p752_p1 = pnand %p750_p0, %p747_p13 }
 0x34e   :  { %755 = shalt.err (!%p752_p1)
}
 0x34f   :  { %642 = dma.vmem_to_hbm [thread:$0]  %s637_s3, 2048, %s1065_s5, [#allocation4], %s761_s28, %s761_s28, %s762_s29  }
 0x350   :  { %758 = dma.done.wait [#allocation4], 2048  }
 0x351   :  { %759 = vsyncadd [#allocation4], 4294965248 }
 0x352   :  { %646 = vsyncpa [#allocation3], 1 }
 0x353   :  { %647 = vsyncpa [#allocation4], 1 }

</bundles_post_ra>
